<compile_context>
chip_gen: v6e
topology: v6e:2x2x1
jax: 0.10.0
libtpu: 0.0.40
codegen_flags: <defaults>
</compile_context>

<pallas_src>
import functools

import jax
import jax.numpy as jnp
from jax.experimental import pallas as pl
from jax.experimental.pallas import tpu as pltpu


def _round_up(v, m):
  return ((v + m - 1) // m) * m


def _device_config():
  """Returns (is_v5, use_bf16_epilogue) from the local TPU generation."""
  kind = ""
  try:
    kind = jax.devices()[0].device_kind.lower()
  except Exception:
    pass
  is_v5 = "v5" in kind
  use_bf16_epi = ("v6" in kind) or ("v7" in kind)
  return is_v5, use_bf16_epi


def _pointnet_kernel(x_ref, w1_ref, w2_ref, b2_ref, w3_ref, b3_ref, o_ref,
                     *, num_points, epi_dtype):
  """Per (batch, point-tile) step: 3 fused matmuls (+ReLU), per-tile max.

  Shapes (channel-major, points on the 128-lane axis):
    x_ref  : (1, 4, TP)        f32   (xyz + ones channel for the folded bias)
    w1_ref : (64, 4)           bf16  (BN + conv bias folded)
    w2_ref : (128, 64)         bf16
    b2_ref : (128, 1)          epi_dtype
    w3_ref : (F, 128)          bf16
    b3_ref : (F, 1)            f32
    o_ref  : (1, 1, F, 1)      f32   per-tile partial max (no revisiting)
  """
  j = pl.program_id(1)
  last = pl.num_programs(1) - 1
  tile_p = x_ref.shape[2]

  x = x_ref[0].astype(jnp.bfloat16)                                   # (4, TP)

  # Layer 1: bias folded into the ones channel; K=4 matmul is free on the MXU.
  h = jnp.dot(w1_ref[...], x, preferred_element_type=epi_dtype)       # (64, TP)
  h = jnp.maximum(h, 0)

  # Layer 2.
  h = h if h.dtype == jnp.bfloat16 else h.astype(jnp.bfloat16)
  h = jnp.dot(w2_ref[...], h, preferred_element_type=epi_dtype)       # (128, TP)
  h = jnp.maximum(h + b2_ref[...], 0)

  # Layer 3: f32 output, no ReLU (matches the PyTorch module).
  h = h if h.dtype == jnp.bfloat16 else h.astype(jnp.bfloat16)
  h = jnp.dot(w3_ref[...], h, preferred_element_type=jnp.float32)     # (F, TP)
  h = h + b3_ref[...]

  def store_max(hv):
    o_ref[0, 0] = jnp.max(hv, axis=1, keepdims=True)                  # (F, 1)

  if num_points % tile_p != 0:
    # Only the last point tile carries padded lanes -> gate the mask there.
    @pl.when(j != last)
    def _():
      store_max(h)

    @pl.when(j == last)
    def _():
      point_idx = j * tile_p + jax.lax.broadcasted_iota(
          jnp.int32, (1, tile_p), 1)
      store_max(jnp.where(point_idx < num_points, h, -jnp.inf))
  else:
    store_max(h)


def _fold_bn(w, b, gamma, beta, mean, var, eps=1e-5):
  """Fold conv bias + eval-mode BatchNorm into (W', b').

  conv: y = W x + b ;  bn: z = gamma * (y - mean) / sqrt(var+eps) + beta
  => z = (W * s) x + (b * s + beta - mean * s),  s = gamma / sqrt(var+eps)
  w is stored as (C_in, C_out); returns folded (C_in, C_out) and (C_out,).
  """
  s = gamma / jnp.sqrt(var + eps)
  w_f = w * s[None, :]
  b_f = b * s + beta - mean * s
  return w_f.astype(jnp.float32), b_f.astype(jnp.float32)


@functools.partial(jax.jit, static_argnames=("tile_p", "bf16_epilogue"))
def _pointnet_forward_impl(shapes, params, *, tile_p, bf16_epilogue):
  n, c_in, p = shapes.shape
  assert c_in == 3
  epi_dtype = jnp.bfloat16 if bf16_epilogue else jnp.float32

  w1, b1 = _fold_bn(params["w1"], params["b1"], params["g1"], params["be1"],
                    params["m1"], params["v1"])
  w2, b2 = _fold_bn(params["w2"], params["b2"], params["g2"], params["be2"],
                    params["m2"], params["v2"])
  w3, b3 = _fold_bn(params["w3"], params["b3"], params["g3"], params["be3"],
                    params["m3"], params["v3"])
  feat_dim = w3.shape[1]

  # Channel-major weights (C_out, C_in) in bf16 for the MXU.  Layer-1 bias is
  # folded in as a 4th input column (paired with a ones channel in x).
  w1a = jnp.concatenate([w1.T, b1.reshape(-1, 1)], axis=1).astype(jnp.bfloat16)
  w2t = w2.T.astype(jnp.bfloat16)                 # (128, 64)
  w3t = w3.T.astype(jnp.bfloat16)                 # (F, 128)
  b2c = b2.reshape(-1, 1).astype(epi_dtype)       # (128, 1)
  b3c = b3.reshape(-1, 1)                         # (F, 1) f32

  x4 = jnp.concatenate(
      [shapes.astype(jnp.float32), jnp.ones((n, 1, p), jnp.float32)], axis=1)

  num_tiles = pl.cdiv(p, tile_p)
  grid = (n, num_tiles)

  kernel = functools.partial(_pointnet_kernel, num_points=p,
                             epi_dtype=epi_dtype)

  out = pl.pallas_call(
      kernel,
      out_shape=jax.ShapeDtypeStruct((n, num_tiles, feat_dim, 1), jnp.float32),
      grid_spec=pltpu.PrefetchScalarGridSpec(
          num_scalar_prefetch=0,
          grid=grid,
          in_specs=[
              pl.BlockSpec((1, 4, tile_p), lambda i, j: (i, 0, j)),     # x+1
              pl.BlockSpec((64, 4), lambda i, j: (0, 0)),               # w1'
              pl.BlockSpec((128, 64), lambda i, j: (0, 0)),             # w2^T
              pl.BlockSpec((128, 1), lambda i, j: (0, 0)),              # b2
              pl.BlockSpec((feat_dim, 128), lambda i, j: (0, 0)),       # w3^T
              pl.BlockSpec((feat_dim, 1), lambda i, j: (0, 0)),         # b3
          ],
          out_specs=pl.BlockSpec((1, 1, feat_dim, 1),
                                 lambda i, j: (i, j, 0, 0)),
      ),
      compiler_params=pltpu.CompilerParams(
          # No output revisiting -> both axes parallel; lets v7x's two
          # TensorCores split work over batch AND point tiles (good at N=1).
          dimension_semantics=("parallel", "parallel"),
          vmem_limit_bytes=32 * 1024 * 1024),
  )(x4, w1a, w2t, b2c, w3t, b3c)

  # Finish the global max over point tiles (tiny (N, T, F) XLA reduction).
  return jnp.max(out[..., 0], axis=1)  # (N, F)


def pointnet_forward(shapes, params, tile_p=None):
  """shapes: (N, 3, P) float32 (PyTorch NCL layout).  Returns (N, F)."""
  _, _, p = shapes.shape
  is_v5, bf16_epi = _device_config()
  if tile_p is None:
    # Big tiles amortize the ~0.35us/step overhead; cap at 4096 on v5e
    # (single vector-store slot, f32-only epilogue).
    tile_p = 8192 if (p >= 32768 and not is_v5) else 4096
  tile_p = max(128, min(int(tile_p), _round_up(p, 128)))
  return _pointnet_forward_impl(shapes, params, tile_p=tile_p,
                                bf16_epilogue=bf16_epi)


def init_params(key, feature_dim):
  """Deterministic parameter init matching the PyTorch layer shapes.

  Conv1d(in, out, 1) weight (out, in, 1) is stored transposed as (in, out).
  BatchNorm params are in eval/inference form (running stats).
  """
  ks = jax.random.split(key, 6)
  dims = [(3, 64), (64, 128), (128, feature_dim)]
  params = {}
  for idx, (cin, cout) in enumerate(dims, start=1):
    bound = 1.0 / jnp.sqrt(cin)
    params[f"w{idx}"] = jax.random.uniform(
        ks[2 * (idx - 1)], (cin, cout), jnp.float32, -bound, bound)
    params[f"b{idx}"] = jax.random.uniform(
        ks[2 * (idx - 1) + 1], (cout,), jnp.float32, -bound, bound)
    params[f"g{idx}"] = jnp.ones((cout,), jnp.float32)               # BN gamma
    params[f"be{idx}"] = jnp.zeros((cout,), jnp.float32)             # BN beta
    params[f"m{idx}"] = 0.01 * jnp.arange(cout, dtype=jnp.float32)   # run mean
    params[f"v{idx}"] = jnp.ones((cout,), jnp.float32)               # run var
  return params


def pointnet_reference(shapes, params, eps=1e-5):
  """Plain-JAX reference (eval-mode BN) on NCL input (N, 3, P)."""

  def layer(h, i, relu):
    w = params[f"w{i}"]                                   # (C_in, C_out)
    y = jnp.einsum("ncp,cd->ndp", h, w) + params[f"b{i}"][None, :, None]
    y = (y - params[f"m{i}"][None, :, None]) / jnp.sqrt(
        params[f"v{i}"][None, :, None] + eps)
    y = y * params[f"g{i}"][None, :, None] + params[f"be{i}"][None, :, None]
    return jnp.maximum(y, 0.0) if relu else y

  h = layer(shapes, 1, True)
  h = layer(h, 2, True)
  h = layer(h, 3, False)
  return jnp.max(h, axis=2)  # (N, F)


if __name__ == "__main__":
  # TODO(synk): BatchNorm is evaluated in inference mode (running stats);
  # PyTorch training-mode batch statistics are not reproduced.
  key = jax.random.PRNGKey(0)
  k_x, k_p = jax.random.split(key)

  batch = 2
  num_points = 200          # deliberately NOT a multiple of 128 -> tail mask
  feature_dim = 128

  shapes = jax.random.normal(k_x, (batch, 3, num_points), jnp.float32)
  params = init_params(k_p, feature_dim)

  out = pointnet_forward(shapes, params)
  out = jax.block_until_ready(out)

  ref = pointnet_reference(shapes, params)
  assert out.shape == (batch, feature_dim)
  max_err = float(jnp.max(jnp.abs(out - ref)))
  # bf16 MXU inputs with f32 accumulation -> widened tolerance vs f32 ref.
  assert jnp.allclose(out, ref, atol=5e-2, rtol=5e-2), max_err

  print("KERNEL_OK")
</pallas_src>

<mosaic_0001>
module attributes {stable_mosaic.version = 11 : i64} {
  func.func @_pointnet_kernel(%arg0: i32, %arg1: i32, %arg2: memref<1x4x256xf32, #tpu.memory_space<vmem>>, %arg3: memref<64x4xbf16, #tpu.memory_space<vmem>>, %arg4: memref<128x64xbf16, #tpu.memory_space<vmem>>, %arg5: memref<128x1xf32, #tpu.memory_space<vmem>>, %arg6: memref<128x128xbf16, #tpu.memory_space<vmem>>, %arg7: memref<128x1xf32, #tpu.memory_space<vmem>>, %arg8: memref<1x1x128x1xf32, #tpu.memory_space<vmem>>) attributes {dimension_semantics = [#tpu.dimension_semantics<parallel>, #tpu.dimension_semantics<parallel>], iteration_bounds = array<i64: 2, 1>, scalar_prefetch = 0 : i64, scratch_operands = 0 : i64, tpu.core_type = #tpu.core_type<tc>, window_params = [{transform_indices = @transform_0, window_bounds = array<i64: 1, 4, 256>}, {pipeline_mode = #tpu.pipeline_mode<synchronous>, transform_indices = @transform_1, window_bounds = array<i64: 64, 4>}, {pipeline_mode = #tpu.pipeline_mode<synchronous>, transform_indices = @transform_2, window_bounds = array<i64: 128, 64>}, {pipeline_mode = #tpu.pipeline_mode<synchronous>, transform_indices = @transform_3, window_bounds = array<i64: 128, 1>}, {pipeline_mode = #tpu.pipeline_mode<synchronous>, transform_indices = @transform_4, window_bounds = array<i64: 128, 128>}, {pipeline_mode = #tpu.pipeline_mode<synchronous>, transform_indices = @transform_5, window_bounds = array<i64: 128, 1>}, {transform_indices = @transform_6, window_bounds = array<i64: 1, 1, 128, 1>}]} {
    %c0 = arith.constant 0 : index
    %c0_0 = arith.constant 0 : index
    %c0_1 = arith.constant 0 : index
    %0 = vector.load %arg2[%c0, %c0_0, %c0_1] : memref<1x4x256xf32, #tpu.memory_space<vmem>>, vector<1x4x256xf32>
    %1 = vector.shape_cast %0 : vector<1x4x256xf32> to vector<4x256xf32>
    %2 = arith.truncf %1 : vector<4x256xf32> to vector<4x256xbf16>
    %c0_2 = arith.constant 0 : index
    %c0_3 = arith.constant 0 : index
    %3 = vector.load %arg3[%c0_2, %c0_3] : memref<64x4xbf16, #tpu.memory_space<vmem>>, vector<64x4xbf16>
    %cst = arith.constant dense<0.000000e+00> : vector<64x256xf32>
    %4 = tpu.matmul %3, %2, %cst {dimension_numbers = #tpu.dot_dimension_numbers<[1], [0], [0], [1], [0, 0, 1, 1], [], []>} : vector<64x4xbf16>, vector<4x256xbf16>, vector<64x256xf32> -> vector<64x256xf32>
    %cst_4 = arith.constant 0.000000e+00 : f32
    %5 = vector.broadcast %cst_4 : f32 to vector<64x256xf32>
    %6 = arith.maximumf %4, %5 : vector<64x256xf32>
    %7 = arith.truncf %6 : vector<64x256xf32> to vector<64x256xbf16>
    %c0_5 = arith.constant 0 : index
    %c0_6 = arith.constant 0 : index
    %8 = vector.load %arg4[%c0_5, %c0_6] : memref<128x64xbf16, #tpu.memory_space<vmem>>, vector<128x64xbf16>
    %cst_7 = arith.constant dense<0.000000e+00> : vector<128x256xf32>
    %9 = tpu.matmul %8, %7, %cst_7 {dimension_numbers = #tpu.dot_dimension_numbers<[1], [0], [0], [1], [0, 0, 1, 1], [], []>} : vector<128x64xbf16>, vector<64x256xbf16>, vector<128x256xf32> -> vector<128x256xf32>
    %c0_8 = arith.constant 0 : index
    %c0_9 = arith.constant 0 : index
    %10 = vector.load %arg5[%c0_8, %c0_9] : memref<128x1xf32, #tpu.memory_space<vmem>>, vector<128x1xf32>
    %11 = vector.broadcast %10 : vector<128x1xf32> to vector<128x256xf32>
    %12 = arith.addf %9, %11 : vector<128x256xf32>
    %cst_10 = arith.constant 0.000000e+00 : f32
    %13 = vector.broadcast %cst_10 : f32 to vector<128x256xf32>
    %14 = arith.maximumf %12, %13 : vector<128x256xf32>
    %15 = arith.truncf %14 : vector<128x256xf32> to vector<128x256xbf16>
    %c0_11 = arith.constant 0 : index
    %c0_12 = arith.constant 0 : index
    %16 = vector.load %arg6[%c0_11, %c0_12] : memref<128x128xbf16, #tpu.memory_space<vmem>>, vector<128x128xbf16>
    %cst_13 = arith.constant dense<0.000000e+00> : vector<128x256xf32>
    %17 = tpu.matmul %16, %15, %cst_13 {dimension_numbers = #tpu.dot_dimension_numbers<[1], [0], [0], [1], [0, 0, 1, 1], [], []>} : vector<128x128xbf16>, vector<128x256xbf16>, vector<128x256xf32> -> vector<128x256xf32>
    %c0_14 = arith.constant 0 : index
    %c0_15 = arith.constant 0 : index
    %18 = vector.load %arg7[%c0_14, %c0_15] : memref<128x1xf32, #tpu.memory_space<vmem>>, vector<128x1xf32>
    %19 = vector.broadcast %18 : vector<128x1xf32> to vector<128x256xf32>
    %20 = arith.addf %17, %19 : vector<128x256xf32>
    %c0_i32 = arith.constant 0 : i32
    %21 = arith.cmpi ne, %arg1, %c0_i32 : i32
    %22 = arith.extui %21 : i1 to i32
    %c0_i32_16 = arith.constant 0 : i32
    %23 = arith.cmpi ne, %22, %c0_i32_16 : i32
    scf.if %23 {
      %cst_19 = arith.constant dense<0xFF800000> : vector<128xf32>
      %27 = vector.multi_reduction <maximumf>, %20, %cst_19 [1] : vector<128x256xf32> to vector<128xf32>
      %28 = vector.shape_cast %27 : vector<128xf32> to vector<128x1xf32>
      %c0_20 = arith.constant 0 : index
      %c0_21 = arith.constant 0 : index
      %c0_22 = arith.constant 0 : index
      %c0_23 = arith.constant 0 : index
      %29 = vector.load %arg8[%c0_20, %c0_21, %c0_22, %c0_23] : memref<1x1x128x1xf32, #tpu.memory_space<vmem>>, vector<1x1x128x1xf32>
      %30 = vector.shape_cast %29 : vector<1x1x128x1xf32> to vector<128x1xf32>
      %31 = vector.shape_cast %28 : vector<128x1xf32> to vector<1x1x128x1xf32>
      tpu.vector_store %arg8[%c0_20, %c0_21, %c0_22, %c0_23], %31 {strides = array<i32>} : memref<1x1x128x1xf32, #tpu.memory_space<vmem>>, vector<1x1x128x1xf32>,
    } else {
    }
    %c0_i32_17 = arith.constant 0 : i32
    %24 = arith.cmpi eq, %arg1, %c0_i32_17 : i32
    %25 = arith.extui %24 : i1 to i32
    %c0_i32_18 = arith.constant 0 : i32
    %26 = arith.cmpi ne, %25, %c0_i32_18 : i32
    scf.if %26 {
      %c256_i32 = arith.constant 256 : i32
      %27 = arith.muli %arg1, %c256_i32 : i32
      %28 = tpu.iota {dimensions = array<i32: 1>} : vector<1x256xi32>
      %29 = vector.broadcast %27 : i32 to vector<1x256xi32>
      %30 = arith.addi %29, %28 : vector<1x256xi32>
      %c200_i32 = arith.constant 200 : i32
      %31 = vector.broadcast %c200_i32 : i32 to vector<1x256xi32>
      %32 = arith.cmpi slt, %30, %31 : vector<1x256xi32>
      %cst_19 = arith.constant 0xFF800000 : f32
      %33 = vector.shape_cast %32 : vector<1x256xi1> to vector<1x256xi1>
      %34 = vector.broadcast %33 : vector<1x256xi1> to vector<128x256xi1>
      %35 = vector.broadcast %cst_19 : f32 to vector<128x256xf32>
      %36 = arith.select %34, %20, %35 : vector<128x256xi1>, vector<128x256xf32>
      %cst_20 = arith.constant dense<0xFF800000> : vector<128xf32>
      %37 = vector.multi_reduction <maximumf>, %36, %cst_20 [1] : vector<128x256xf32> to vector<128xf32>
      %38 = vector.shape_cast %37 : vector<128xf32> to vector<128x1xf32>
      %c0_21 = arith.constant 0 : index
      %c0_22 = arith.constant 0 : index
      %c0_23 = arith.constant 0 : index
      %c0_24 = arith.constant 0 : index
      %39 = vector.load %arg8[%c0_21, %c0_22, %c0_23, %c0_24] : memref<1x1x128x1xf32, #tpu.memory_space<vmem>>, vector<1x1x128x1xf32>
      %40 = vector.shape_cast %39 : vector<1x1x128x1xf32> to vector<128x1xf32>
      %41 = vector.shape_cast %38 : vector<128x1xf32> to vector<1x1x128x1xf32>
      tpu.vector_store %arg8[%c0_21, %c0_22, %c0_23, %c0_24], %41 {strides = array<i32>} : memref<1x1x128x1xf32, #tpu.memory_space<vmem>>, vector<1x1x128x1xf32>,
    } else {
    }
    return
  }
  func.func @transform_0(%arg0: i32, %arg1: i32) -> (i32, i32, i32) {
    %c0_i32 = arith.constant 0 : i32
    %c0_i32_0 = arith.constant 0 : i32
    return %arg0, %c0_i32, %arg1 : i32, i32, i32
  }
  func.func @transform_1(%arg0: i32, %arg1: i32) -> (i32, i32) {
    %c0_i32 = arith.constant 0 : i32
    %c0_i32_0 = arith.constant 0 : i32
    %c0_i32_1 = arith.constant 0 : i32
    return %c0_i32, %c0_i32_0 : i32, i32
  }
  func.func @transform_2(%arg0: i32, %arg1: i32) -> (i32, i32) {
    %c0_i32 = arith.constant 0 : i32
    %c0_i32_0 = arith.constant 0 : i32
    %c0_i32_1 = arith.constant 0 : i32
    return %c0_i32, %c0_i32_0 : i32, i32
  }
  func.func @transform_3(%arg0: i32, %arg1: i32) -> (i32, i32) {
    %c0_i32 = arith.constant 0 : i32
    %c0_i32_0 = arith.constant 0 : i32
    %c0_i32_1 = arith.constant 0 : i32
    return %c0_i32, %c0_i32_0 : i32, i32
  }
  func.func @transform_4(%arg0: i32, %arg1: i32) -> (i32, i32) {
    %c0_i32 = arith.constant 0 : i32
    %c0_i32_0 = arith.constant 0 : i32
    %c0_i32_1 = arith.constant 0 : i32
    return %c0_i32, %c0_i32_0 : i32, i32
  }
  func.func @transform_5(%arg0: i32, %arg1: i32) -> (i32, i32) {
    %c0_i32 = arith.constant 0 : i32
    %c0_i32_0 = arith.constant 0 : i32
    %c0_i32_1 = arith.constant 0 : i32
    return %c0_i32, %c0_i32_0 : i32, i32
  }
  func.func @transform_6(%arg0: i32, %arg1: i32) -> (i32, i32, i32, i32) {
    %c0_i32 = arith.constant 0 : i32
    %c0_i32_0 = arith.constant 0 : i32
    %c0_i32_1 = arith.constant 0 : i32
    return %arg0, %arg1, %c0_i32, %c0_i32_0 : i32, i32, i32, i32
  }
}

</mosaic_0001>

<bundles_post_ra>
// kernel: _pointnet_forward_impl.1
= control target key start
LH: loop header
LB: loop body
LE: loop exit
PB: predicated region body
PF: predicated region fallthrough
CT: control target
= control target key end

     0   :  { %s1495_s21 = smov 0   ;;  %s1497_s22 = smov 0   ;;  %s1878_s0 = inlined_call_operand.vmem [shape: f32[2,4,200], index: 0, kind: input, shape index: {}]   ;;  %s1879_s1 = inlined_call_operand.vmem [shape: bf16[64,4], index: 1, kind: input, shape index: {}]   ;;  %s1880_s2 = inlined_call_operand.vmem [shape: bf16[128,64], index: 2, kind: input, shape index: {}]   ;;  %s1881_s3 = inlined_call_operand.vmem [shape: f32[128,1], index: 3, kind: input, shape index: {}]   ;;  %s1882_s4 = inlined_call_operand.vmem [shape: bf16[128,128], index: 4, kind: input, shape index: {}]   ;;  %s1883_s5 = inlined_call_operand.vmem [shape: f32[128,1], index: 5, kind: input, shape index: {}]   ;;  %s1884_s6 = inlined_call_operand.vmem [shape: f32[2,1,128,1], index: 6, kind: output, shape index: {}]  }
   0x1   :  { %s1499_s23 = smov 0  }
   0x2 LB: > { %s28_s24 = sadd.s32 1, %s1453_s22  ;;  %p1329_p0 = scmp.ge.s32.totalorder %s1457_s23, 1  ;;  %s1457_s23 = sphi %s1499_s23, %s16_s23   ;;  %s1453_s22 = sphi %s1497_s22, %s1886_s22   ;;  %s1449_s21 = sphi %s1495_s21, %s1885_s21  }
   0x3   : > { %p30_p1 = scmp.ge.s32.totalorder %s28_s24, 2  ;;  %p233_p2 = scmp.lt.s32.totalorder %s1457_s23, 3 }
   0x5   : > { %s1888_s24 = smov (%p30_p1, %s28_s24), 0  ;;  %p234_p3 = pnand %p1329_p0, %p233_p2 }
   0x6   : > { %p272_p4 = scmp.lt.s32.totalorder (!%p234_p3), %s1449_s21, 1 }
   0x7   : > { %237 = sbr.rel (%p234_p3) target bundleno = 955 (0x3bb), region = 44 }
   0xc   : > { %v1459_v0 = vmov 0   ;;  %s1890_s21 = smov (!%p272_p4, %s1449_s21), 1  ;;  %vm338_vm0 = vcmask 1041408   ;;  %v1415_v6 = vld [vmem:[%s1879_s1] sm:$0xff]   ;;  %vm325_vm1 = vcmask 31744   ;;  %v1416_v7 = vld [vmem:[%s1879_s1 + $0x8] sm:$0xff]  }
   0xd   : > { %377 = vmatprep.mubr.bf16.mxu0 %v1459_v0  ;;  %651 = vmatprep.mubr.bf16.mxu1 %v1459_v0  ;;  %s1369_s25 = sshll.u32 %s1890_s21, 3  ;;  %v1417_v8 = vld [vmem:[%s1879_s1 + $0x10] sm:$0xff]   ;;  %v1418_v9 = vld [vmem:[%s1879_s1 + $0x18] sm:$0xff]   ;;  %v470_v11 = vld [vmem:[%s1881_s3 + $0x60] sm:$0xff]  ;;  %vm594_vm2 = vcmask 523264   ;;  %s1370_s9 = sshll.u32 %s1890_s21, 7 }
   0xe   : > { %1412 = vset.pattern.permute.xlu0 %v1459_v0  ;;  %1413 = vset.pattern.permute.xlu1 %v1459_v0  ;;  %s279_s28 = scalar_lea.vmem %s1878_s0, %s1369_s25  ;;  %v472_v10 = vld [vmem:[%s1881_s3 + $0x70] sm:$0xff]  ;;  %v473_v12 = vld [vmem:[%s1881_s3 + $0x78] sm:$0xff]  ;;  %v471_v13 = vld [vmem:[%s1881_s3 + $0x68] sm:$0xff]  ;;  %s1835_s12 = scalar_lea.vmem %s1884_s6, %s1370_s9  ;;  %vm1219_vm4 = vcmask 7168  }
   0xf   : > { %v291_v1 = vld [vmem:[%s279_s28] sm:$0xff]  ;;  %546 = vperm.xlu0 %1412, %v472_v10   ;;  %536 = vperm.xlu1 %1413, %v470_v11   ;;  %v468_v14 = vld [vmem:[%s1881_s3 + $0x50] sm:$0xff]  ;;  %v469_v15 = vld [vmem:[%s1881_s3 + $0x58] sm:$0xff] }
  0x10   : > { %v293_v2 = vcombine.high %v291_v1, %v291_v1  ;;  %v295_v3 = vpack.c.bf16 %v291_v1, %v291_v1  ;;  %v466_v16 = vld [vmem:[%s1881_s3 + $0x40] sm:$0xff]  ;;  %v467_v17 = vld [vmem:[%s1881_s3 + $0x48] sm:$0xff]  ;;  %v464_v18 = vld [vmem:[%s1881_s3 + $0x30] sm:$0xff] }
  0x11   : > { %v465_v19 = vld [vmem:[%s1881_s3 + $0x38] sm:$0xff]  ;;  %v462_v20 = vld [vmem:[%s1881_s3 + $0x20] sm:$0xff]  ;;  %v463_v21 = vld [vmem:[%s1881_s3 + $0x28] sm:$0xff] }
  0x12   : > { %v296_v4 = vpack.c.bf16 %v293_v2, %v293_v2  ;;  %v340_v5 = vsel %vm338_vm0, %v295_v3, 0  ;;  %v460_v22 = vld [vmem:[%s1881_s3 + $0x10] sm:$0xff]  ;;  %v461_v23 = vld [vmem:[%s1881_s3 + $0x18] sm:$0xff]  ;;  %v458_v24 = vld [vmem:[%s1881_s3] sm:$0xff] }
  0x13   : > { %551 = vperm.xlu0 %1412, %v473_v12   ;;  %541 = vperm.xlu1 %1413, %v471_v13   ;;  %v459_v25 = vld [vmem:[%s1881_s3 + $0x8] sm:$0xff]  ;;  %v796_v26 = vld [vmem:[%s1883_s5] sm:$0xff]  ;;  %v798_v28 = vld [vmem:[%s1883_s5 + $0x10] sm:$0xff] }
  0x14   : > { %1338 = vmatprep.subr.msk.bf16.mxu0 %vm338_vm0, %v296_v4  ;;  %v797_v27 = vld [vmem:[%s1883_s5 + $0x8] sm:$0xff]  ;;  %v799_v30 = vld [vmem:[%s1883_s5 + $0x18] sm:$0xff]  ;;  %v800_v31 = vld [vmem:[%s1883_s5 + $0x20] sm:$0xff] }
  0x15   : > { %360 = vmatpush1.bf16.msra.mxu0 %v340_v5  ;;  %v801_v34 = vld [vmem:[%s1883_s5 + $0x28] sm:$0xff]  ;;  %v802_v35 = vld [vmem:[%s1883_s5 + $0x30] sm:$0xff]  ;;  %v803_v38 = vld [vmem:[%s1883_s5 + $0x38] sm:$0xff] }
  0x16   : > { %v804_v39 = vld [vmem:[%s1883_s5 + $0x40] sm:$0xff]  ;;  %v805_v42 = vld [vmem:[%s1883_s5 + $0x48] sm:$0xff]  ;;  %v806_v43 = vld [vmem:[%s1883_s5 + $0x50] sm:$0xff] }
  0x17   : > { %526 = vperm.xlu0 %1412, %v468_v14   ;;  %531 = vperm.xlu1 %1413, %v469_v15   ;;  %v807_v46 = vld [vmem:[%s1883_s5 + $0x58] sm:$0xff]  ;;  %v808_v47 = vld [vmem:[%s1883_s5 + $0x60] sm:$0xff]  ;;  %v809_v50 = vld [vmem:[%s1883_s5 + $0x68] sm:$0xff] }
  0x18   : > { %1339 = vmatmul.mubr.msk.bf16.vlgmr.msra.gmra.mxu0 %vm325_vm1, %v1415_v6  ;;  %v810_v51 = vld [vmem:[%s1883_s5 + $0x70] sm:$0xff]  ;;  %v811_v54 = vld [vmem:[%s1883_s5 + $0x78] sm:$0xff] }
  0x19   : > { %387 = vmatprep.mubr.bf16.mxu0 %v1459_v0 }
  0x1b   : > { %516 = vperm.xlu0 %1412, %v466_v16   ;;  %521 = vperm.xlu1 %1413, %v467_v17  }
  0x1f   : > { %506 = vperm.xlu0 %1412, %v464_v18   ;;  %511 = vperm.xlu1 %1413, %v465_v19   ;;  %v1419_v19 = vld [vmem:[%s1880_s2] sm:$0xff]  }
  0x20   : > { %1340 = vmatmul.mubr.msk.bf16.gmra.mxu0 %vm325_vm1, %v1416_v7 }
  0x21   : > { %397 = vmatprep.mubr.bf16.mxu0 %v1459_v0 }
  0x23   : > { %496 = vperm.xlu0 %1412, %v462_v20   ;;  %501 = vperm.xlu1 %1413, %v463_v21   ;;  %v1420_v20 = vld [vmem:[%s1880_s2 + $0x8] sm:$0xff]   ;;  %v1421_v21 = vld [vmem:[%s1880_s2 + $0x10] sm:$0xff]  }
  0x27   : > { %486 = vperm.xlu0 %1412, %v460_v22   ;;  %491 = vperm.xlu1 %1413, %v461_v23   ;;  %v1422_v22 = vld [vmem:[%s1880_s2 + $0x18] sm:$0xff]   ;;  %v1423_v23 = vld [vmem:[%s1880_s2 + $0x20] sm:$0xff]  }
  0x28   : > { %1341 = vmatmul.mubr.msk.bf16.gmra.mxu0 %vm325_vm1, %v1417_v8 }
  0x29   : > { %407 = vmatprep.mubr.bf16.mxu0 %v1459_v0 }
  0x2b   : > { %476 = vperm.xlu0 %1412, %v458_v24   ;;  %481 = vperm.xlu1 %1413, %v459_v25   ;;  %v1424_v24 = vld [vmem:[%s1880_s2 + $0x28] sm:$0xff]   ;;  %v1425_v25 = vld [vmem:[%s1880_s2 + $0x30] sm:$0xff]  }
  0x2f   : > { %814 = vperm.xlu0 %1412, %v796_v26   ;;  %819 = vperm.xlu1 %1413, %v797_v27   ;;  %v1426_v26 = vld [vmem:[%s1880_s2 + $0x38] sm:$0xff]  }
  0x30   : > { %1342 = vmatmul.mubr.msk.bf16.gmra.mxu0 %vm325_vm1, %v1418_v9 }
  0x31   : > { %972 = vmatprep.mubr.bf16.mxu0 %v1459_v0 }
  0x33   : > { %824 = vperm.xlu0 %1412, %v798_v28   ;;  %829 = vperm.xlu1 %1413, %v799_v30  }
  0x37   : > { %834 = vperm.xlu0 %1412, %v800_v31   ;;  %839 = vperm.xlu1 %1413, %v801_v34  }
  0x3b   : > { %844 = vperm.xlu0 %1412, %v802_v35   ;;  %849 = vperm.xlu1 %1413, %v803_v38  }
  0x3f   : > { %854 = vperm.xlu0 %1412, %v804_v39   ;;  %859 = vperm.xlu1 %1413, %v805_v42  }
  0x43   : > { %864 = vperm.xlu0 %1412, %v806_v43   ;;  %869 = vperm.xlu1 %1413, %v807_v46  }
  0x47   : > { %874 = vperm.xlu0 %1412, %v808_v47   ;;  %879 = vperm.xlu1 %1413, %v809_v50  }
  0x4b   : > { %884 = vperm.xlu0 %1412, %v810_v51   ;;  %889 = vperm.xlu1 %1413, %v811_v54  }
  0x8a   : > { %v1684_v27 = vpop.permute.xlu0 %546  ;;  %v1686_v28 = vpop.permute.xlu1 %536 }
  0x8e   : > { %v1690_v30 = vpop.permute.xlu1 %541 }
  0xd8   : > { %v1596_v29 = vpop.f32.mrf.mxu0 }
  0xd9   : > { %v418_v17 = vmax.f32 %v1596_v29, 0.0  ;;  %v1688_v29 = vpop.permute.xlu0 %551 }
  0xda   : > { %v1604_v32 = vpop.f32.mrf.mxu0 }
  0xdb   : > { %v419_v13 = vmax.f32 %v1604_v32, 0.0  ;;  %v1694_v32 = vpop.permute.xlu1 %531 }
  0xdc   : > { %v1606_v33 = vpop.f32.mrf.mxu0 }
  0xdd   : > { %v420_v14 = vmax.f32 %v1606_v33, 0.0  ;;  %v1692_v31 = vpop.permute.xlu0 %526 }
  0xde   : > { %v385_v36 = vpop.f32.mrf.mxu0 }
  0xdf   : > { %v421_v10 = vmax.f32 %v385_v36, 0.0  ;;  %v434_v18 = vpack.c.bf16 %v420_v14, %v418_v17  ;;  %v1698_v34 = vpop.permute.xlu1 %521 }
  0xe0   : > { %v389_v37 = vpop.f32.mrf.mxu0 }
  0xe1   : > { %v422_v12 = vmax.f32 %v389_v37, 0.0  ;;  %v435_v16 = vpack.c.bf16 %v421_v10, %v419_v13  ;;  %v1696_v33 = vpop.permute.xlu0 %516 }
  0xe2   : > { %v391_v40 = vpop.f32.mrf.mxu0 }
  0xe3   : > { %v423_v7 = vmax.f32 %v391_v40, 0.0  ;;  %v1702_v36 = vpop.permute.xlu1 %511 }
  0xe4   : > { %v393_v41 = vpop.f32.mrf.mxu0 }
  0xe5   : > { %v424_v8 = vmax.f32 %v393_v41, 0.0  ;;  %v1700_v35 = vpop.permute.xlu0 %506 }
  0xe6   : > { %v395_v44 = vpop.f32.mrf.mxu0 }
  0xe7   : > { %v425_v4 = vmax.f32 %v395_v44, 0.0  ;;  %v436_v15 = vpack.c.bf16 %v424_v8, %v422_v12  ;;  %v1706_v38 = vpop.permute.xlu1 %501 }
  0xe8   : > { %v399_v45 = vpop.f32.mrf.mxu0 }
  0xe9   : > { %v426_v6 = vmax.f32 %v399_v45, 0.0  ;;  %v437_v11 = vpack.c.bf16 %v425_v4, %v423_v7  ;;  %v1704_v37 = vpop.permute.xlu0 %496 }
  0xea   : > { %v401_v48 = vpop.f32.mrf.mxu0 }
  0xeb   : > { %v427_v63 = vmax.f32 %v401_v48, 0.0  ;;  %v492_v40 = vpop.permute.xlu1 %491 }
  0xec   : > { %v403_v49 = vpop.f32.mrf.mxu0 }
  0xed   : > { %v428_v2 = vmax.f32 %v403_v49, 0.0  ;;  %v487_v39 = vpop.permute.xlu0 %486 }
  0xee   : > { %v405_v52 = vpop.f32.mrf.mxu0 }
  0xef   : > { %v429_v59 = vmax.f32 %v405_v52, 0.0  ;;  %v438_v9 = vpack.c.bf16 %v428_v2, %v426_v6  ;;  %v482_v44 = vpop.permute.xlu1 %481 }
  0xf0   : > { %v409_v53 = vpop.f32.mrf.mxu0 }
  0xf1   : > { %v430_v62 = vmax.f32 %v409_v53, 0.0  ;;  %v439_v5 = vpack.c.bf16 %v429_v59, %v427_v63  ;;  %v477_v41 = vpop.permute.xlu0 %476 }
  0xf2   : > { %v411_v55 = vpop.f32.mrf.mxu0 }
  0xf3   : > { %v431_v60 = vmax.f32 %v411_v55, 0.0 }
  0xf4   : > { %v413_v56 = vpop.f32.mrf.mxu0 }
  0xf5   : > { %v432_v57 = vmax.f32 %v413_v56, 0.0 }
  0xf6   : > { %v415_v58 = vpop.f32.mrf.mxu0 }
  0xf7   : > { %v433_v61 = vmax.f32 %v415_v58, 0.0  ;;  %v440_v3 = vpack.c.bf16 %v432_v57, %v430_v62 }
  0xf9   : > { %v441_v1 = vpack.c.bf16 %v433_v61, %v431_v60 }
  0xfb   : > { %627 = vmatprep.subr.bf16.mxu1 %v441_v1 }
  0xfc   : > { %628 = vmatpush1.bf16.msra.mxu1 %v440_v3 }
  0xfd   : > { %629 = vmatprep.subr.bf16.mxu1 %v439_v5 }
 0x100   : > { %630 = vmatpush1.bf16.msra.mxu1 %v438_v9 }
 0x101   : > { %631 = vmatprep.subr.bf16.mxu1 %v437_v11 }
 0x104   : > { %632 = vmatpush1.bf16.msra.mxu1 %v436_v15 }
 0x105   : > { %633 = vmatprep.subr.bf16.mxu1 %v435_v16 }
 0x108   : > { %634 = vmatpush1.bf16.msra.mxu1 %v434_v18 }
 0x10b   : > { %1351 = vmatmul.mubr.msk.bf16.vlgmr.msra.gmra.mxu1 %vm594_vm2, %v1419_v19 }
 0x10c   : > { %661 = vmatprep.mubr.bf16.mxu1 %v1459_v0 }
 0x113   : > { %1352 = vmatmul.mubr.msk.bf16.gmra.mxu1 %vm594_vm2, %v1420_v20 }
 0x114   : > { %671 = vmatprep.mubr.bf16.mxu1 %v1459_v0 }
 0x11b   : > { %1353 = vmatmul.mubr.msk.bf16.gmra.mxu1 %vm594_vm2, %v1421_v21 }
 0x11c   : > { %681 = vmatprep.mubr.bf16.mxu1 %v1459_v0 }
 0x123   : > { %1354 = vmatmul.mubr.msk.bf16.gmra.mxu1 %vm594_vm2, %v1422_v22 }
 0x124   : > { %691 = vmatprep.mubr.bf16.mxu1 %v1459_v0 }
 0x12b   : > { %1355 = vmatmul.mubr.msk.bf16.gmra.mxu1 %vm594_vm2, %v1423_v23 }
 0x12c   : > { %701 = vmatprep.mubr.bf16.mxu1 %v1459_v0 }
 0x133   : > { %1356 = vmatmul.mubr.msk.bf16.gmra.mxu1 %vm594_vm2, %v1424_v24 }
 0x134   : > { %711 = vmatprep.mubr.bf16.mxu1 %v1459_v0 }
 0x13b   : > { %1357 = vmatmul.mubr.msk.bf16.gmra.mxu1 %vm594_vm2, %v1425_v25 }
 0x13c   : > { %721 = vmatprep.mubr.bf16.mxu1 %v1459_v0 }
 0x143   : > { %1358 = vmatmul.mubr.msk.bf16.gmra.mxu1 %vm594_vm2, %v1426_v26 }
 0x144   : > { %1042 = vmatprep.mubr.bf16.mxu1 %v1459_v0 }
 0x1cb   : > { %v653_v42 = vpop.f32.mrf.mxu1 }
 0x1cc   : > { %v654_v45 = vadd.f32 %v653_v42, %v477_v41 }
 0x1cd   : > { %v655_v43 = vpop.f32.mrf.mxu1 }
 0x1ce   : > { %v656_v47 = vadd.f32 %v655_v43, %v477_v41  ;;  %v732_v50 = vmax.f32 %v654_v45, 0.0 }
 0x1cf   : > { %v657_v46 = vpop.f32.mrf.mxu1 }
 0x1d0   : > { %v658_v48 = vadd.f32 %v657_v46, %v482_v44  ;;  %v733_v54 = vmax.f32 %v656_v47, 0.0 }
 0x1d1   : > { %v659_v49 = vpop.f32.mrf.mxu1 }
 0x1d2   : > { %v734_v51 = vmax.f32 %v658_v48, 0.0  ;;  %v660_v52 = vadd.f32 %v659_v49, %v482_v44 }
 0x1d3   : > { %v663_v53 = vpop.f32.mrf.mxu1 }
 0x1d4   : > { %v1708_v55 = vpack.c.bf16 %v734_v51, %v732_v50  ;;  %v735_v56 = vmax.f32 %v660_v52, 0.0  ;;  %v664_v59 = vadd.f32 %v663_v53, %v487_v39 }
 0x1d5   : > { %v665_v57 = vpop.f32.mrf.mxu1 }
 0x1d6   : > { %v1710_v58 = vpack.c.bf16 %v735_v56, %v733_v54  ;;  %v666_v61 = vadd.f32 %v665_v57, %v487_v39  ;;  %v736_v1 = vmax.f32 %v664_v59, 0.0 }
 0x1d7   : > { %v667_v60 = vpop.f32.mrf.mxu1 }
 0x1d8   : > { %v668_v62 = vadd.f32 %v667_v60, %v492_v40  ;;  %v737_v5 = vmax.f32 %v666_v61, 0.0 }
 0x1d9   : > { %v669_v63 = vpop.f32.mrf.mxu1 }
 0x1da   : > { %v738_v2 = vmax.f32 %v668_v62, 0.0  ;;  %v670_v3 = vadd.f32 %v669_v63, %v492_v40 }
 0x1db   : > { %v1712_v4 = vpop.f32.mrf.mxu1 }
 0x1dc   : > { %v1714_v6 = vpack.c.bf16 %v738_v2, %v736_v1  ;;  %v739_v7 = vmax.f32 %v670_v3, 0.0 }
 0x1dd   : > { %v1716_v8 = vpop.f32.mrf.mxu1 }
 0x1de   : > { %v1718_v9 = vpack.c.bf16 %v739_v7, %v737_v5 }
 0x1df   : > { %v1720_v10 = vpop.f32.mrf.mxu1 }
 0x1e1   : > { %v1722_v11 = vpop.f32.mrf.mxu1 }
 0x1e3   : > { %v1724_v12 = vpop.f32.mrf.mxu1 }
 0x1e5   : > { %v685_v13 = vpop.f32.mrf.mxu1 }
 0x1e7   : > { %v1726_v14 = vpop.f32.mrf.mxu1 }
 0x1e9   : > { %v689_v15 = vpop.f32.mrf.mxu1 }
 0x1eb   : > { %v693_v16 = vpop.f32.mrf.mxu1 }
 0x1ed   : > { %v695_v17 = vpop.f32.mrf.mxu1 }
 0x1ef   : > { %v697_v18 = vpop.f32.mrf.mxu1 }
 0x1f1   : > { %v699_v19 = vpop.f32.mrf.mxu1 }
 0x1f3   : > { %v703_v20 = vpop.f32.mrf.mxu1 }
 0x1f4   : > { %v704_v3 = vadd.f32 %v703_v20, %v1692_v31 }
 0x1f5   : > { %v705_v21 = vpop.f32.mrf.mxu1 }
 0x1f6   : > { %v706_v60 = vadd.f32 %v705_v21, %v1692_v31  ;;  %v686_v31 = vadd.f32 %v685_v13, %v1700_v35  ;;  %v676_v13 = vadd.f32 %v1716_v8, %v1704_v37 }
 0x1f7   : > { %v707_v22 = vpop.f32.mrf.mxu1 }
 0x1f8   : > { %v708_v62 = vadd.f32 %v707_v22, %v1694_v32  ;;  %v753_v7 = vmax.f32 %v706_v60, 0.0  ;;  %v820_v60 = vpop.permute.xlu1 %819 }
 0x1f9   : > { %v709_v23 = vpop.f32.mrf.mxu1 }
 0x1fa   : > { %v710_v52 = vadd.f32 %v709_v23, %v1694_v32  ;;  %v698_v32 = vadd.f32 %v697_v18, %v1698_v34  ;;  %v754_v21 = vmax.f32 %v708_v62, 0.0 }
 0x1fb   : > { %v713_v24 = vpop.f32.mrf.mxu1 }
 0x1fc   : > { %v714_v57 = vadd.f32 %v713_v24, %v1686_v28 }
 0x1fd   : > { %v715_v25 = vpop.f32.mrf.mxu1 }
 0x1fe   : > { %v716_v48 = vadd.f32 %v715_v25, %v1686_v28  ;;  %v756_v5 = vmax.f32 %v714_v57, 0.0  ;;  %v696_v28 = vadd.f32 %v695_v17, %v1696_v33  ;;  %v694_v25 = vadd.f32 %v693_v16, %v1696_v33 }
 0x1ff   : > { %v717_v26 = vpop.f32.mrf.mxu1  ;;  %v688_v17 = vadd.f32 %v1726_v14, %v1702_v36  ;;  %v684_v33 = vadd.f32 %v1724_v12, %v1700_v35  ;;  %v741_v12 = vmax.f32 %v676_v13, 0.0 }
 0x200   : > { %v718_v50 = vadd.f32 %v717_v26, %v1690_v30  ;;  %v757_v61 = vmax.f32 %v716_v48, 0.0  ;;  %v752_v26 = vmax.f32 %v704_v3, 0.0  ;;  %v749_v20 = vmax.f32 %v696_v28, 0.0  ;;  %v1434_v48 = vld [vmem:[%s1882_s4 + $0x30] sm:$0xff]  }
 0x201   : > { %v719_v39 = vpop.f32.mrf.mxu1  ;;  %v748_v16 = vmax.f32 %v694_v25, 0.0  ;;  %v746_v14 = vmax.f32 %v688_v17, 0.0  ;;  %v744_v35 = vmax.f32 %v684_v33, 0.0 }
 0x202   : > { %v720_v43 = vadd.f32 %v719_v39, %v1690_v30  ;;  %v758_v63 = vmax.f32 %v718_v50, 0.0  ;;  %v755_v30 = vmax.f32 %v710_v52, 0.0  ;;  %v774_v18 = vpack.c.bf16 %v754_v21, %v752_v26  ;;  %v830_v21 = vpop.permute.xlu1 %829 }
 0x203   : > { %v723_v40 = vpop.f32.mrf.mxu1 }
 0x204   : > { %v724_v46 = vadd.f32 %v723_v40, %v1684_v27  ;;  %v759_v53 = vmax.f32 %v720_v43, 0.0  ;;  %v776_v22 = vpack.c.bf16 %v758_v63, %v756_v5  ;;  %v775_v24 = vpack.c.bf16 %v755_v30, %v753_v7 }
 0x205   : > { %v725_v41 = vpop.f32.mrf.mxu1 }
 0x206   : > { %v726_v44 = vadd.f32 %v725_v41, %v1684_v27  ;;  %v760_v59 = vmax.f32 %v724_v46, 0.0  ;;  %v777_v2 = vpack.c.bf16 %v759_v53, %v757_v61  ;;  %v745_v41 = vmax.f32 %v686_v31, 0.0  ;;  %v815_v53 = vpop.permute.xlu0 %814 }
 0x207   : > { %v727_v42 = vpop.f32.mrf.mxu1 }
 0x208   : > { %v728_v45 = vadd.f32 %v727_v42, %v1688_v29  ;;  %v761_v54 = vmax.f32 %v726_v44, 0.0  ;;  %v674_v44 = vadd.f32 %v1712_v4, %v1704_v37  ;;  %v1427_v37 = vld [vmem:[%s1882_s4] sm:$0xff]   ;;  %v1428_v4 = vld [vmem:[%s1882_s4 + $0x38] sm:$0xff]  }
 0x209   : > { %v729_v47 = vpop.f32.mrf.mxu1 }
 0x20a   : > { %v730_v49 = vadd.f32 %v729_v47, %v1688_v29  ;;  %v762_v51 = vmax.f32 %v728_v45, 0.0  ;;  %v700_v29 = vadd.f32 %v699_v19, %v1698_v34  ;;  %v690_v19 = vadd.f32 %v689_v15, %v1702_v36  ;;  %v825_v30 = vpop.permute.xlu0 %824 }
 0x20b   : > { %v750_v34 = vmax.f32 %v698_v32, 0.0  ;;  %v680_v15 = vadd.f32 %v1722_v11, %v1706_v38  ;;  %v678_v36 = vadd.f32 %v1720_v10, %v1706_v38  ;;  %v770_v45 = vpack.c.bf16 %v746_v14, %v744_v35  ;;  %v1433_v10 = vld [vmem:[%s1882_s4 + $0x28] sm:$0xff]  }
 0x20c   : > { %v763_v56 = vmax.f32 %v730_v49, 0.0  ;;  %v778_v1 = vpack.c.bf16 %v762_v51, %v760_v59  ;;  %v751_v23 = vmax.f32 %v700_v29, 0.0  ;;  %v747_v39 = vmax.f32 %v690_v19, 0.0 }
 0x20d   : > { %v772_v42 = vpack.c.bf16 %v750_v34, %v748_v16  ;;  %v743_v11 = vmax.f32 %v680_v15, 0.0  ;;  %v742_v8 = vmax.f32 %v678_v36, 0.0  ;;  %v740_v47 = vmax.f32 %v674_v44, 0.0 }
 0x20e   : > { %v779_v27 = vpack.c.bf16 %v763_v56, %v761_v54  ;;  %v773_v40 = vpack.c.bf16 %v751_v23, %v749_v20  ;;  %v771_v43 = vpack.c.bf16 %v747_v39, %v745_v41  ;;  %v1127_v49 = vlaneseq  ;;  %v835_v31 = vpop.permute.xlu0 %834 }
 0x20f   : > { %v769_v46 = vpack.c.bf16 %v743_v11, %v741_v12  ;;  %v768_v38 = vpack.c.bf16 %v742_v8, %v740_v47 }
 0x210   : > { %940 = vmatprep.subr.bf16.mxu0 %v779_v27  ;;  %1371 = vmatprep.subr.bf16.mxu1 %v779_v27  ;;  %v1128_v50 = vand.u32 127, %v1127_v49 }
 0x211   : > { %941 = vmatpush1.bf16.msra.mxu0 %v778_v1  ;;  %1379 = vmatpush1.bf16.msra.mxu1 %v778_v1 }
 0x212   : > { %942 = vmatprep.subr.bf16.mxu0 %v777_v2  ;;  %1372 = vmatprep.subr.bf16.mxu1 %v777_v2  ;;  %v1796_v51 = vadd.s32 128, %v1128_v50  ;;  %v845_v14 = vpop.permute.xlu0 %844 }
 0x214   : > { %vm1134_vm3 = vcmp.lt.s32.totalorder %v1796_v51, 200 }
 0x215   : > { %943 = vmatpush1.bf16.msra.mxu0 %v776_v22  ;;  %1380 = vmatpush1.bf16.msra.mxu1 %v776_v22 }
 0x216   : > { %944 = vmatprep.subr.bf16.mxu0 %v775_v24  ;;  %1373 = vmatprep.subr.bf16.mxu1 %v775_v24 }
 0x219   : > { %945 = vmatpush1.bf16.msra.mxu0 %v774_v18  ;;  %1381 = vmatpush1.bf16.msra.mxu1 %v774_v18 }
 0x21a   : > { %946 = vmatprep.subr.bf16.mxu0 %v773_v40  ;;  %1374 = vmatprep.subr.bf16.mxu1 %v773_v40  ;;  %v840_v40 = vpop.permute.xlu1 %839 }
 0x21d   : > { %947 = vmatpush1.bf16.msra.mxu0 %v772_v42  ;;  %1382 = vmatpush1.bf16.msra.mxu1 %v772_v42 }
 0x21e   : > { %948 = vmatprep.subr.bf16.mxu0 %v771_v43  ;;  %1375 = vmatprep.subr.bf16.mxu1 %v771_v43  ;;  %v850_v8 = vpop.permute.xlu1 %849 }
 0x221   : > { %949 = vmatpush1.bf16.msra.mxu0 %v770_v45  ;;  %1383 = vmatpush1.bf16.msra.mxu1 %v770_v45 }
 0x222   : > { %950 = vmatprep.subr.bf16.mxu0 %v769_v46  ;;  %1376 = vmatprep.subr.bf16.mxu1 %v769_v46 }
 0x225   : > { %951 = vmatpush1.bf16.msra.mxu0 %v768_v38  ;;  %1384 = vmatpush1.bf16.msra.mxu1 %v768_v38  ;;  %v855_v38 = vpop.permute.xlu0 %854 }
 0x226   : > { %952 = vmatprep.subr.bf16.mxu0 %v1718_v9  ;;  %1377 = vmatprep.subr.bf16.mxu1 %v1718_v9  ;;  %v1432_v9 = vld [vmem:[%s1882_s4 + $0x20] sm:$0xff]  }
 0x229   : > { %953 = vmatpush1.bf16.msra.mxu0 %v1714_v6  ;;  %1385 = vmatpush1.bf16.msra.mxu1 %v1714_v6  ;;  %v1430_v6 = vld [vmem:[%s1882_s4 + $0x10] sm:$0xff]  }
 0x22a   : > { %954 = vmatprep.subr.bf16.mxu0 %v1710_v58  ;;  %1378 = vmatprep.subr.bf16.mxu1 %v1710_v58  ;;  %v1429_v58 = vld [vmem:[%s1882_s4 + $0x8] sm:$0xff]  }
 0x22d   : > { %955 = vmatpush1.bf16.msra.mxu0 %v1708_v55  ;;  %1386 = vmatpush1.bf16.msra.mxu1 %v1708_v55  ;;  %v1431_v55 = vld [vmem:[%s1882_s4 + $0x18] sm:$0xff]  }
 0x230   : > { %973 = vmatmul.mubr.bf16.vlgmr.msra.gmra.mxu0 %v1427_v37  ;;  %1043 = vmatmul.mubr.bf16.vlgmr.msra.gmra.mxu1 %v1428_v4 }
 0x231   : > { %982 = vmatprep.mubr.bf16.mxu0 %v1459_v0 }
 0x238   : > { %983 = vmatmul.mubr.bf16.gmra.mxu0 %v1429_v58 }
 0x239   : > { %992 = vmatprep.mubr.bf16.mxu0 %v1459_v0 }
 0x240   : > { %993 = vmatmul.mubr.bf16.gmra.mxu0 %v1430_v6 }
 0x241   : > { %1002 = vmatprep.mubr.bf16.mxu0 %v1459_v0 }
 0x248   : > { %1003 = vmatmul.mubr.bf16.gmra.mxu0 %v1431_v55 }
 0x249   : > { %1012 = vmatprep.mubr.bf16.mxu0 %v1459_v0 }
 0x250   : > { %1013 = vmatmul.mubr.bf16.gmra.mxu0 %v1432_v9 }
 0x251   : > { %1022 = vmatprep.mubr.bf16.mxu0 %v1459_v0 }
 0x258   : > { %1023 = vmatmul.mubr.bf16.gmra.mxu0 %v1433_v10  ;;  %v860_v10 = vpop.permute.xlu1 %859 }
 0x259   : > { %1032 = vmatprep.mubr.bf16.mxu0 %v1459_v0 }
 0x260   : > { %1033 = vmatmul.mubr.bf16.gmra.mxu0 %v1434_v48 }
 0x2f0   : > { %v974_v52 = vpop.f32.mrf.mxu0 }
 0x2f1   : > { %v975_v57 = vadd.f32 %v974_v52, %v815_v53  ;;  %v865_v52 = vpop.permute.xlu0 %864 }
 0x2f2   : > { %v976_v54 = vpop.f32.mrf.mxu0 }
 0x2f3   : > { %v977_v56 = vadd.f32 %v976_v54, %v815_v53 }
 0x2f4   : > { %v978_v59 = vpop.f32.mrf.mxu0 }
 0x2f5   : > { %v1140_v0 = vsel %vm1134_vm3, %v977_v56, -inf  ;;  %v979_v63 = vadd.f32 %v978_v59, %v820_v60  ;;  %v1044_v59 = vpop.f32.mrf.mxu1 }
 0x2f6   : > { %v980_v61 = vpop.f32.mrf.mxu0  ;;  %v1171_v27 = vmax.f32 %v975_v57, %v1140_v0 }
 0x2f7   : > { %v981_v62 = vadd.f32 %v980_v61, %v820_v60  ;;  %v870_v61 = vpop.permute.xlu1 %869 }
 0x2f8   : > { %v984_v1 = vpop.f32.mrf.mxu0  ;;  %1172 = vmax.xlane.f32.xlu0 %v1171_v27 }
 0x2f9   : > { %v1142_v29 = vsel %vm1134_vm3, %v981_v62, -inf  ;;  %v985_v28 = vadd.f32 %v984_v1, %v825_v30  ;;  %v875_v1 = vpop.permute.xlu0 %874 }
 0x2fa   : > { %v986_v2 = vpop.f32.mrf.mxu0  ;;  %v1174_v3 = vmax.f32 %v979_v63, %v1142_v29 }
 0x2fb   : > { %v987_v5 = vadd.f32 %v986_v2, %v825_v30  ;;  %v1046_v30 = vpop.f32.mrf.mxu1 }
 0x2fc   : > { %v988_v7 = vpop.f32.mrf.mxu0  ;;  %1175 = vmax.xlane.f32.xlu1 %v1174_v3 }
 0x2fd   : > { %v1144_v32 = vsel %vm1134_vm3, %v987_v5, -inf  ;;  %v989_v24 = vadd.f32 %v988_v7, %v830_v21 }
 0x2fe   : > { %v990_v22 = vpop.f32.mrf.mxu0  ;;  %v1177_v19 = vmax.f32 %v985_v28, %v1144_v32  ;;  %v880_v32 = vpop.permute.xlu1 %879 }
 0x2ff   : > { %v991_v23 = vadd.f32 %v990_v22, %v830_v21  ;;  %v1048_v22 = vpop.f32.mrf.mxu1 }
 0x300   : > { %v994_v25 = vpop.f32.mrf.mxu0  ;;  %1178 = vmax.xlane.f32.xlu0 %v1177_v19 }
 0x301   : > { %v1146_v26 = vsel %vm1134_vm3, %v991_v23, -inf  ;;  %v995_v18 = vadd.f32 %v994_v25, %v835_v31  ;;  %v885_v25 = vpop.permute.xlu0 %884 }
 0x302   : > { %v996_v20 = vpop.f32.mrf.mxu0  ;;  %v1180_v17 = vmax.f32 %v989_v24, %v1146_v26 }
 0x303   : > { %v997_v34 = vadd.f32 %v996_v20, %v835_v31  ;;  %v1047_v20 = vadd.f32 %v1046_v30, %v885_v25 }
 0x304   : > { %v998_v15 = vpop.f32.mrf.mxu0  ;;  %1181 = vmax.xlane.f32.xlu0 %v1180_v17 }
 0x305   : > { %v1148_v39 = vsel %vm1134_vm3, %v997_v34, -inf  ;;  %v999_v41 = vadd.f32 %v998_v15, %v840_v40  ;;  %v1050_v34 = vpop.f32.mrf.mxu1 }
 0x306   : > { %v1000_v33 = vpop.f32.mrf.mxu0  ;;  %v1183_v16 = vmax.f32 %v995_v18, %v1148_v39 }
 0x307   : > { %v1001_v13 = vadd.f32 %v1000_v33, %v840_v40  ;;  %v890_v40 = vpop.permute.xlu1 %889 }
 0x308   : > { %v1004_v36 = vpop.f32.mrf.mxu0  ;;  %1184 = vmax.xlane.f32.xlu1 %v1183_v16 }
 0x309   : > { %v1150_v42 = vsel %vm1134_vm3, %v1001_v13, -inf  ;;  %v1005_v35 = vadd.f32 %v1004_v36, %v845_v14  ;;  %v1051_v13 = vadd.f32 %v1050_v34, %v890_v40  ;;  %v1168_v36 = vsel %vm1134_vm3, %v1047_v20, -inf }
 0x30a   : > { %v1006_v11 = vpop.f32.mrf.mxu0  ;;  %v1186_v43 = vmax.f32 %v999_v41, %v1150_v42 }
 0x30b   : > { %v1007_v44 = vadd.f32 %v1006_v11, %v845_v14  ;;  %v1045_v14 = vadd.f32 %v1044_v59, %v885_v25 }
 0x30c   : > { %v1008_v12 = vpop.f32.mrf.mxu0  ;;  %1187 = vmax.xlane.f32.xlu0 %v1186_v43 }
 0x30d   : > { %v1152_v45 = vsel %vm1134_vm3, %v1007_v44, -inf  ;;  %v1009_v4 = vadd.f32 %v1008_v12, %v850_v8  ;;  %v1213_v43 = vmax.f32 %v1045_v14, %v1168_v36  ;;  %v1049_v12 = vadd.f32 %v1048_v22, %v890_v40 }
 0x30e   : > { %v1010_v46 = vpop.f32.mrf.mxu0  ;;  %v1189_v47 = vmax.f32 %v1005_v35, %v1152_v45  ;;  %v1170_v35 = vsel %vm1134_vm3, %v1051_v13, -inf }
 0x30f   : > { %v1011_v37 = vadd.f32 %v1010_v46, %v850_v8  ;;  %v1216_v8 = vmax.f32 %v1049_v12, %v1170_v35 }
 0x310   : > { %v1014_v58 = vpop.f32.mrf.mxu0  ;;  %1190 = vmax.xlane.f32.xlu1 %v1189_v47 }
 0x311   : > { %v1154_v6 = vsel %vm1134_vm3, %v1011_v37, -inf  ;;  %v1015_v49 = vadd.f32 %v1014_v58, %v855_v38 }
 0x312   : > { %v1016_v55 = vpop.f32.mrf.mxu0  ;;  %v1192_v9 = vmax.f32 %v1009_v4, %v1154_v6 }
 0x313   : > { %v1017_v48 = vadd.f32 %v1016_v55, %v855_v38 }
 0x314   : > { %v1018_v50 = vpop.f32.mrf.mxu0  ;;  %1193 = vmax.xlane.f32.xlu0 %v1192_v9 }
 0x315   : > { %v1156_v53 = vsel %vm1134_vm3, %v1017_v48, -inf  ;;  %v1019_v0 = vadd.f32 %v1018_v50, %v860_v10 }
 0x316   : > { %v1020_v54 = vpop.f32.mrf.mxu0  ;;  %v1195_v56 = vmax.f32 %v1015_v49, %v1156_v53 }
 0x317   : > { %v1021_v57 = vadd.f32 %v1020_v54, %v860_v10 }
 0x318   : > { %v1024_v60 = vpop.f32.mrf.mxu0  ;;  %1196 = vmax.xlane.f32.xlu1 %v1195_v56 }
 0x319   : > { %v1158_v27 = vsel %vm1134_vm3, %v1021_v57, -inf  ;;  %v1025_v2 = vadd.f32 %v1024_v60, %v865_v52 }
 0x31a   : > { %v1026_v62 = vpop.f32.mrf.mxu0  ;;  %v1198_v63 = vmax.f32 %v1019_v0, %v1158_v27 }
 0x31b   : > { %v1027_v29 = vadd.f32 %v1026_v62, %v865_v52 }
 0x31c   : > { %v1028_v3 = vpop.f32.mrf.mxu0  ;;  %1199 = vmax.xlane.f32.xlu0 %v1198_v63 }
 0x31d   : > { %v1160_v5 = vsel %vm1134_vm3, %v1027_v29, -inf  ;;  %v1029_v19 = vadd.f32 %v1028_v3, %v870_v61 }
 0x31e   : > { %v1030_v28 = vpop.f32.mrf.mxu0  ;;  %v1201_v7 = vmax.f32 %v1025_v2, %v1160_v5 }
 0x31f   : > { %v1031_v21 = vadd.f32 %v1030_v28, %v870_v61 }
 0x320   : > { %v1034_v23 = vpop.f32.mrf.mxu0  ;;  %1202 = vmax.xlane.f32.xlu1 %v1201_v7 }
 0x321   : > { %v1162_v24 = vsel %vm1134_vm3, %v1031_v21, -inf  ;;  %v1035_v18 = vadd.f32 %v1034_v23, %v875_v1 }
 0x322   : > { %v1036_v26 = vpop.f32.mrf.mxu0  ;;  %v1204_v31 = vmax.f32 %v1029_v19, %v1162_v24 }
 0x323   : > { %v1037_v17 = vadd.f32 %v1036_v26, %v875_v1 }
 0x324   : > { %v1038_v15 = vpop.f32.mrf.mxu0  ;;  %1205 = vmax.xlane.f32.xlu0 %v1204_v31 }
 0x325   : > { %v1164_v39 = vsel %vm1134_vm3, %v1037_v17, -inf  ;;  %v1039_v42 = vadd.f32 %v1038_v15, %v880_v32 }
 0x326   : > { %v1040_v33 = vpop.f32.mrf.mxu0  ;;  %v1207_v16 = vmax.f32 %v1035_v18, %v1164_v39 }
 0x327   : > { %v1041_v41 = vadd.f32 %v1040_v33, %v880_v32 }
 0x328   : > { %1208 = vmax.xlane.f32.xlu1 %v1207_v16 }
 0x329   : > { %v1166_v11 = vsel %vm1134_vm3, %v1041_v41, -inf }
 0x32a   : > { %v1210_v44 = vmax.f32 %v1039_v42, %v1166_v11 }
 0x32c   : > { %1214 = vmax.xlane.f32.xlu1 %v1213_v43  ;;  %1211 = vmax.xlane.f32.xlu0 %v1210_v44 }
 0x330   : > { %1217 = vmax.xlane.f32.xlu0 %v1216_v8 }
 0x381   : > { %v1173_v51 = vpop.xlane.xlu0 %1172 }
 0x382   : > { %1220 = vst.msk [vmem:[%s1835_s12] sm:$0xff] %vm1219_vm4, %v1173_v51 }
 0x385   : > { %v1176_v45 = vpop.xlane.xlu1 %1175 }
 0x386   : > { %1221 = vst.msk [vmem:[%s1835_s12 + $0x8] sm:$0xff] %vm1219_vm4, %v1176_v45 }
 0x389   : > { %v1179_v46 = vpop.xlane.xlu0 %1178 }
 0x38a   : > { %1222 = vst.msk [vmem:[%s1835_s12 + $0x10] sm:$0xff] %vm1219_vm4, %v1179_v46 }
 0x38d   : > { %v1182_v47 = vpop.xlane.xlu0 %1181 }
 0x38e   : > { %1223 = vst.msk [vmem:[%s1835_s12 + $0x18] sm:$0xff] %vm1219_vm4, %v1182_v47 }
 0x391   : > { %v1185_v38 = vpop.xlane.xlu1 %1184 }
 0x392   : > { %1224 = vst.msk [vmem:[%s1835_s12 + $0x20] sm:$0xff] %vm1219_vm4, %v1185_v38 }
 0x395   : > { %v1188_v37 = vpop.xlane.xlu0 %1187 }
 0x396   : > { %1225 = vst.msk [vmem:[%s1835_s12 + $0x28] sm:$0xff] %vm1219_vm4, %v1188_v37 }
 0x399   : > { %v1191_v4 = vpop.xlane.xlu1 %1190 }
 0x39a   : > { %1226 = vst.msk [vmem:[%s1835_s12 + $0x30] sm:$0xff] %vm1219_vm4, %v1191_v4 }
 0x39d   : > { %v1194_v58 = vpop.xlane.xlu0 %1193 }
 0x39e   : > { %1227 = vst.msk [vmem:[%s1835_s12 + $0x38] sm:$0xff] %vm1219_vm4, %v1194_v58 }
 0x3a1   : > { %v1197_v6 = vpop.xlane.xlu1 %1196 }
 0x3a2   : > { %1228 = vst.msk [vmem:[%s1835_s12 + $0x40] sm:$0xff] %vm1219_vm4, %v1197_v6 }
 0x3a5   : > { %v1200_v55 = vpop.xlane.xlu0 %1199 }
 0x3a6   : > { %1229 = vst.msk [vmem:[%s1835_s12 + $0x48] sm:$0xff] %vm1219_vm4, %v1200_v55 }
 0x3a9   : > { %v1203_v9 = vpop.xlane.xlu1 %1202 }
 0x3aa   : > { %1230 = vst.msk [vmem:[%s1835_s12 + $0x50] sm:$0xff] %vm1219_vm4, %v1203_v9 }
 0x3ad   : > { %v1206_v10 = vpop.xlane.xlu0 %1205 }
 0x3ae   : > { %1231 = vst.msk [vmem:[%s1835_s12 + $0x58] sm:$0xff] %vm1219_vm4, %v1206_v10 }
 0x3b1   : > { %v1209_v48 = vpop.xlane.xlu1 %1208 }
 0x3b2   : > { %1232 = vst.msk [vmem:[%s1835_s12 + $0x60] sm:$0xff] %vm1219_vm4, %v1209_v48 }
 0x3b5   : > { %v1215_v49 = vpop.xlane.xlu1 %1214  ;;  %v1212_v50 = vpop.xlane.xlu0 %1211 }
 0x3b6   : > { %1234 = vst.msk [vmem:[%s1835_s12 + $0x70] sm:$0xff] %vm1219_vm4, %v1215_v49  ;;  %1233 = vst.msk [vmem:[%s1835_s12 + $0x68] sm:$0xff] %vm1219_vm4, %v1212_v50 }
 0x3b9   : > { %v1218_v52 = vpop.xlane.xlu0 %1217 }
 0x3ba   : > { %1235 = vst.msk [vmem:[%s1835_s12 + $0x78] sm:$0xff] %vm1219_vm4, %v1218_v52 }
 0x3bb PF: > { %s16_s23 = sadd.s32 1, %s1457_s23   ;;  %s1885_s21 = smov %s1453_s22 }
 0x3bc   : > { %p13_p5 = scmp.ge.s32.totalorder %s16_s23, 4   ;;  %s1886_s22 = smov %s1888_s24 }
 0x3be   :  { %15 = sbr.rel (!%p13_p5) target bundleno = 2 (0x2), region = 82 }

</bundles_post_ra>
